<compile_context>
chip_gen: v7x
topology: tpu7x:2x2x1
jax: 0.10.0
libtpu: 0.0.40
codegen_flags: <defaults>
</compile_context>

<pallas_src>
import jax
import jax.numpy as jnp
from jax.experimental import pallas as pl
from jax.experimental.pallas import tpu as pltpu


_LANE = 128
_SUBLANE = 8


def _round_up(x, m):
    return (x + m - 1) // m * m


def _vmem_capacity_bytes():
    """Physical VMEM per TensorCore (generation-aware)."""
    try:
        return int(pltpu.get_tpu_info().vmem_capacity_bytes)
    except Exception:
        # Conservative fallback: v7x has 64 MiB per TC (v5e/v6e have 128 MiB).
        return 64 * 1024 * 1024


# ----------------------------------------------------------------------------
# Fused path: whole MLP in one kernel, activations resident in VMEM.
# ----------------------------------------------------------------------------
def _make_fused_kernel(num_layers, in_pads, out_pads):
    """Builds a kernel over refs = (x, w_0..w_{L-1}, b_0..b_{L-1}, out[, h])."""

    def kernel(*refs):
        x_ref = refs[0]
        w_refs = refs[1:1 + num_layers]
        b_refs = refs[1 + num_layers:1 + 2 * num_layers]
        o_ref = refs[1 + 2 * num_layers]
        h_ref = refs[2 + 2 * num_layers] if num_layers > 1 else None

        # TODO(synk): static unroll over the (small) layer stack; for very deep
        # uniform-width stacks switch to lax.fori_loop over a stacked weight
        # tensor to bound vreg live ranges / instruction memory.
        for layer in range(num_layers):
            h_in = x_ref[...] if layer == 0 else h_ref[:, :in_pads[layer]]
            y = jnp.dot(h_in, w_refs[layer][...],
                        preferred_element_type=jnp.float32)    # MXU, f32 acc
            y = jnp.maximum(y + b_refs[layer][...], 0.0)        # bias + ReLU (VPU, f32)
            if layer == num_layers - 1:
                o_ref[...] = y.astype(o_ref.dtype)
            else:
                # Single cast per layer when storing into the compute-dtype scratch.
                h_ref[:, :out_pads[layer]] = y.astype(h_ref.dtype)

    return kernel


def mlp_fused(x_pad, w_list, b_list, *, tm, compute_dtype, vmem_cap,
              single_buffer_weights=True):
    b_pad, in_pad0 = x_pad.shape
    num_layers = len(w_list)
    assert in_pad0 == w_list[0].shape[0]
    in_pads = [int(w.shape[0]) for w in w_list]
    out_pads = [int(w.shape[1]) for w in w_list]
    out_pad_last = out_pads[-1]
    cbytes = jnp.dtype(compute_dtype).itemsize

    scratch_width = max(out_pads[:-1]) if num_layers > 1 else 0
    scratch_shapes = ([pltpu.VMEM((tm, scratch_width), compute_dtype)]
                      if num_layers > 1 else [])

    # Footprint-derived VMEM limit (always passed explicitly).
    wbuf = 1 if single_buffer_weights else 2
    resident = wbuf * (sum(kp * np_ for kp, np_ in zip(in_pads, out_pads)) * cbytes
                       + sum(out_pads) * 4)
    tiles = (2 * tm * in_pad0 * cbytes          # x tile, double-buffered
             + 2 * tm * out_pad_last * 4        # f32 out tile, double-buffered
             + tm * scratch_width * cbytes)     # activation scratch
    vmem_limit = min(vmem_cap, int(1.25 * (resident + tiles)) + (4 << 20))

    def const_spec(shape):
        # Constant block index across the whole grid -> single-buffer it.
        if single_buffer_weights:
            return pl.BlockSpec(shape, lambda i: (0, 0),
                                pipeline_mode=pl.Buffered(1))
        return pl.BlockSpec(shape, lambda i: (0, 0))

    in_specs = [pl.BlockSpec((tm, in_pad0), lambda i: (i, 0))]
    in_specs += [const_spec(tuple(w.shape)) for w in w_list]
    in_specs += [const_spec(tuple(b.shape)) for b in b_list]

    return pl.pallas_call(
        _make_fused_kernel(num_layers, in_pads, out_pads),
        out_shape=jax.ShapeDtypeStruct((b_pad, out_pad_last), jnp.float32),
        grid_spec=pltpu.PrefetchScalarGridSpec(
            num_scalar_prefetch=0,
            grid=(b_pad // tm,),
            in_specs=in_specs,
            out_specs=pl.BlockSpec((tm, out_pad_last), lambda i: (i, 0)),
            scratch_shapes=scratch_shapes,
        ),
        compiler_params=pltpu.CompilerParams(
            dimension_semantics=("parallel",),   # batch tiles across TCs (v7x)
            vmem_limit_bytes=vmem_limit),
    )(x_pad, *w_list, *b_list)


# ----------------------------------------------------------------------------
# Tiled fallback: one Linear(+ReLU) layer.
# ----------------------------------------------------------------------------
def _linear_relu_kernel(x_ref, w_ref, b_ref, o_ref):
    # K fits in one tile: single MXU pass, no accumulator scratch.
    y = jnp.dot(x_ref[...], w_ref[...], preferred_element_type=jnp.float32)
    o_ref[...] = jnp.maximum(y + b_ref[...], 0.0).astype(o_ref.dtype)


def _linear_relu_acc_kernel(x_ref, w_ref, b_ref, o_ref, acc_ref):
    k = pl.program_id(2)

    @pl.when(k == 0)
    def _init():
        acc_ref[...] = jnp.zeros_like(acc_ref)

    acc_ref[...] += jnp.dot(x_ref[...], w_ref[...],
                            preferred_element_type=jnp.float32)

    @pl.when(k == pl.num_programs(2) - 1)
    def _finalize():
        o_ref[...] = jnp.maximum(acc_ref[...] + b_ref[...], 0.0).astype(o_ref.dtype)


def linear_relu_tiled(x, w, b, *, tm, out_dtype, vmem_cap):
    m, k_dim = x.shape
    k_dim2, n = w.shape
    assert k_dim == k_dim2 and m % tm == 0 and n % _LANE == 0 and k_dim % _LANE == 0
    cb = jnp.dtype(x.dtype).itemsize
    ob = jnp.dtype(out_dtype).itemsize

    # 256-wide N tiles fill the 256x256 MXUs on v6e/v7x; otherwise 128.
    tn = 256 if n % 256 == 0 else 128

    # Largest K tile that fits comfortably double-buffered.  When it covers the
    # whole K, the grid collapses to 2-D and the accumulator scratch disappears.
    budget = int(0.5 * vmem_cap)

    def tile_bytes(tk_cand):
        return (2 * tm * tk_cand * cb + 2 * tk_cand * tn * cb
                + 2 * tm * tn * ob + tm * tn * 4 + 2 * tn * 4)

    tk = 128
    for cand in (2048, 1024, 512, 256, 128):
        if k_dim % cand:
            continue
        if tile_bytes(cand) <= budget:
            tk = cand
            break
    vmem_limit = min(vmem_cap, int(1.25 * tile_bytes(tk)) + (4 << 20))

    if tk == k_dim:
        return pl.pallas_call(
            _linear_relu_kernel,
            out_shape=jax.ShapeDtypeStruct((m, n), out_dtype),
            grid_spec=pltpu.PrefetchScalarGridSpec(
                num_scalar_prefetch=0,
                grid=(m // tm, n // tn),
                in_specs=[
                    pl.BlockSpec((tm, tk), lambda i, j: (i, 0)),
                    pl.BlockSpec((tk, tn), lambda i, j: (0, j)),
                    pl.BlockSpec((1, tn), lambda i, j: (0, j)),
                ],
                out_specs=pl.BlockSpec((tm, tn), lambda i, j: (i, j)),
            ),
            compiler_params=pltpu.CompilerParams(
                dimension_semantics=("parallel", "parallel"),
                vmem_limit_bytes=vmem_limit),
        )(x, w, b)

    return pl.pallas_call(
        _linear_relu_acc_kernel,
        out_shape=jax.ShapeDtypeStruct((m, n), out_dtype),
        grid_spec=pltpu.PrefetchScalarGridSpec(
            num_scalar_prefetch=0,
            grid=(m // tm, n // tn, k_dim // tk),
            in_specs=[
                pl.BlockSpec((tm, tk), lambda i, j, kk: (i, kk)),
                pl.BlockSpec((tk, tn), lambda i, j, kk: (kk, j)),
                pl.BlockSpec((1, tn), lambda i, j, kk: (0, j)),
            ],
            out_specs=pl.BlockSpec((tm, tn), lambda i, j, kk: (i, j)),
            scratch_shapes=[pltpu.VMEM((tm, tn), jnp.float32)],
        ),
        compiler_params=pltpu.CompilerParams(
            dimension_semantics=("parallel", "parallel", "arbitrary"),
            vmem_limit_bytes=vmem_limit),
    )(x, w, b)


# ----------------------------------------------------------------------------
# Module mirror.
# ----------------------------------------------------------------------------
class MLPPallas:
    """Mirror of the PyTorch MLP: Linear -> activation for every hidden size."""
    # TODO(synk): `activation` is a constructor argument in the PyTorch module;
    # ReLU is implemented here (ReLU(0) == 0 keeps zero-padded lanes exactly
    # zero through the padded layer stack).  Activations with f(0) != 0 would
    # need the padded lanes masked between layers.

    def __init__(self, input_size, hidden_sizes, key, *,
                 compute_dtype=jnp.bfloat16, force_tiled=False):
        self.compute_dtype = compute_dtype
        self.dims = [int(input_size)] + [int(h) for h in hidden_sizes]
        self.vmem_cap = _vmem_capacity_bytes()

        self.params = []
        d_in = int(input_size)
        for d_out in hidden_sizes:
            key, kw, kb = jax.random.split(key, 3)
            bound = 1.0 / (d_in ** 0.5)   # scale like PyTorch's default uniform
            w = jax.random.uniform(kw, (d_in, d_out), jnp.float32, -bound, bound)
            b = jax.random.uniform(kb, (d_out,), jnp.float32, -bound, bound)
            self.params.append((w, b))
            d_in = int(d_out)

        # Per-layer lane-dense padding: each weight to its OWN
        # (round_up(k,128), round_up(n,128)); no square max-width padding.
        cbytes = jnp.dtype(compute_dtype).itemsize
        self.w_list, self.b_list = [], []
        self.in_pads, self.out_pads = [], []
        for w, b in self.params:
            kp = _round_up(w.shape[0], _LANE)
            np_ = _round_up(w.shape[1], _LANE)
            self.w_list.append(
                jnp.pad(w, ((0, kp - w.shape[0]),
                            (0, np_ - w.shape[1]))).astype(compute_dtype))
            self.b_list.append(
                jnp.pad(b, (0, np_ - b.shape[0])).reshape(1, np_).astype(jnp.float32))
            self.in_pads.append(kp)
            self.out_pads.append(np_)

        # Fused if the SINGLE-buffered resident weight+bias stack leaves >=30%
        # of this generation's physical VMEM for batch tiles + scratch
        # (~45 MiB budget on v7x, ~90 MiB on v5e/v6e).
        self.resident_bytes = (
            sum(kp * np_ for kp, np_ in zip(self.in_pads, self.out_pads)) * cbytes
            + sum(self.out_pads) * 4)
        self.use_fused = ((not force_tiled)
                          and self.resident_bytes <= int(0.7 * self.vmem_cap))

    # ---- tile-size selection -------------------------------------------------
    def _pick_fused_tm(self, batch):
        m8 = _round_up(batch, _SUBLANE)
        if m8 <= 256:
            # At most two small tiles; tiny batches keep one sublane-padded tile.
            return min(m8, 128)
        cbytes = jnp.dtype(self.compute_dtype).itemsize
        in_pad, out_pad = self.in_pads[0], self.out_pads[-1]
        scratch = max(self.out_pads[:-1]) if len(self.out_pads) > 1 else 0
        budget = int(0.8 * self.vmem_cap) - self.resident_bytes
        for tm in (1024, 512, 256, 128):
            if 2 * tm > m8:     # keep >=2 batch tiles so both v7x TCs get work
                continue
            tile_bytes = (2 * tm * in_pad * cbytes + 2 * tm * out_pad * 4
                          + tm * scratch * cbytes)
            if tile_bytes <= budget:
                return tm
        return 128

    def _pick_tiled_tm(self, batch):
        m8 = _round_up(batch, _SUBLANE)
        if m8 <= 128:
            return m8
        for tm in (512, 256, 128):
            if tm <= m8:
                return tm
        return 128

    # ---- forward ---------------------------------------------------------------
    def __call__(self, x):
        batch, d_in = x.shape
        assert d_in == self.dims[0]
        out_dim = self.dims[-1]

        if self.use_fused:
            tm = self._pick_fused_tm(batch)
            b_pad = _round_up(batch, tm)
            x_pad = jnp.zeros((b_pad, self.in_pads[0]), self.compute_dtype)
            x_pad = x_pad.at[:batch, :d_in].set(x.astype(self.compute_dtype))
            try:
                y_pad = mlp_fused(x_pad, self.w_list, self.b_list, tm=tm,
                                  compute_dtype=self.compute_dtype,
                                  vmem_cap=self.vmem_cap,
                                  single_buffer_weights=True)
            except Exception:
                # Fallback for toolchains without pl.Buffered(1) single-buffering.
                y_pad = mlp_fused(x_pad, self.w_list, self.b_list, tm=tm,
                                  compute_dtype=self.compute_dtype,
                                  vmem_cap=self.vmem_cap,
                                  single_buffer_weights=False)
            return y_pad[:batch, :out_dim].astype(x.dtype)

        # Tiled fallback: activations bounce through HBM between layers
        # (unavoidable at this size) but stay compute-dtype + lane-dense.
        tm = self._pick_tiled_tm(batch)
        b_pad = _round_up(batch, tm)
        h = jnp.zeros((b_pad, self.in_pads[0]), self.compute_dtype)
        h = h.at[:batch, :d_in].set(x.astype(self.compute_dtype))
        for li, (wp, bp) in enumerate(zip(self.w_list, self.b_list)):
            last = li == len(self.w_list) - 1
            h = linear_relu_tiled(
                h, wp, bp, tm=tm,
                out_dtype=jnp.float32 if last else self.compute_dtype,
                vmem_cap=self.vmem_cap)
        return h[:batch, :out_dim].astype(x.dtype)


if __name__ == "__main__":
    key = jax.random.PRNGKey(0)
    k_in1, k_p1, k_in2, k_p2 = jax.random.split(key, 4)

    # ---- 1) Fused path, f32 compute: tight check against plain-JAX reference.
    batch, input_size, hidden_sizes = 8, 32, (64, 32)
    x = jax.random.normal(k_in1, (batch, input_size), jnp.float32)
    mlp_f32 = MLPPallas(input_size, hidden_sizes, k_p1, compute_dtype=jnp.float32)
    out_f32 = jax.block_until_ready(mlp_f32(x))
    ref = x
    for w, b in mlp_f32.params:
        ref = jnp.maximum(ref @ w + b, 0.0)
    assert out_f32.shape == (batch, hidden_sizes[-1])
    assert jnp.allclose(out_f32, ref, atol=1e-5, rtol=1e-5)

    # ---- 2) Fused path, bf16 MXU operands with f32 accumulation: loose check.
    mlp_bf16 = MLPPallas(input_size, hidden_sizes, k_p1, compute_dtype=jnp.bfloat16)
    out_bf16 = jax.block_until_ready(mlp_bf16(x))
    assert out_bf16.shape == (batch, hidden_sizes[-1])
    assert jnp.allclose(out_bf16, ref, atol=5e-2, rtol=5e-2)

    # ---- 3) Tiled fallback path (forced), bf16 operands, per-layer padding,
    #         tn=256 where N allows and K collapsed to a single tile.
    batch2, input_size2, hidden_sizes2 = 64, 1024, (512, 384)
    x2 = jax.random.normal(k_in2, (batch2, input_size2), jnp.float32)
    mlp_tiled = MLPPallas(input_size2, hidden_sizes2, k_p2,
                          compute_dtype=jnp.bfloat16, force_tiled=True)
    out_tiled = jax.block_until_ready(mlp_tiled(x2))
    ref2 = x2
    for w, b in mlp_tiled.params:
        ref2 = jnp.maximum(ref2 @ w + b, 0.0)
    assert out_tiled.shape == (batch2, hidden_sizes2[-1])
    assert jnp.allclose(out_tiled, ref2, atol=5e-2, rtol=5e-2)

    print("KERNEL_OK")
</pallas_src>

<mosaic_0001>
module attributes {stable_mosaic.version = 11 : i64} {
  func.func @kernel(%arg0: i32, %arg1: memref<8x128xf32, #tpu.memory_space<vmem>>, %arg2: memref<128x128xf32, #tpu.memory_space<vmem>>, %arg3: memref<128x128xf32, #tpu.memory_space<vmem>>, %arg4: memref<1x128xf32, #tpu.memory_space<vmem>>, %arg5: memref<1x128xf32, #tpu.memory_space<vmem>>, %arg6: memref<8x128xf32, #tpu.memory_space<vmem>>, %arg7: memref<8x128xf32, #tpu.memory_space<vmem>>) attributes {dimension_semantics = [#tpu.dimension_semantics<parallel>], iteration_bounds = array<i64: 1>, scalar_prefetch = 0 : i64, scratch_operands = 1 : i64, tpu.core_type = #tpu.core_type<tc>, window_params = [{transform_indices = @transform_0, window_bounds = array<i64: 8, 128>}, {pipeline_mode = #tpu.pipeline_mode<synchronous>, transform_indices = @transform_1, window_bounds = array<i64: 128, 128>}, {pipeline_mode = #tpu.pipeline_mode<synchronous>, transform_indices = @transform_2, window_bounds = array<i64: 128, 128>}, {pipeline_mode = #tpu.pipeline_mode<synchronous>, transform_indices = @transform_3, window_bounds = array<i64: 1, 128>}, {pipeline_mode = #tpu.pipeline_mode<synchronous>, transform_indices = @transform_4, window_bounds = array<i64: 1, 128>}, {transform_indices = @transform_5, window_bounds = array<i64: 8, 128>}]} {
    %c0 = arith.constant 0 : index
    %c0_0 = arith.constant 0 : index
    %0 = vector.load %arg1[%c0, %c0_0] : memref<8x128xf32, #tpu.memory_space<vmem>>, vector<8x128xf32>
    %c0_1 = arith.constant 0 : index
    %c0_2 = arith.constant 0 : index
    %1 = vector.load %arg2[%c0_1, %c0_2] : memref<128x128xf32, #tpu.memory_space<vmem>>, vector<128x128xf32>
    %cst = arith.constant dense<0.000000e+00> : vector<8x128xf32>
    %2 = tpu.matmul %0, %1, %cst {dimension_numbers = #tpu.dot_dimension_numbers<[1], [0], [0], [1], [0, 0, 1, 1], [], []>} : vector<8x128xf32>, vector<128x128xf32>, vector<8x128xf32> -> vector<8x128xf32>
    %c0_3 = arith.constant 0 : index
    %c0_4 = arith.constant 0 : index
    %3 = vector.load %arg4[%c0_3, %c0_4] : memref<1x128xf32, #tpu.memory_space<vmem>>, vector<1x128xf32>
    %4 = vector.broadcast %3 : vector<1x128xf32> to vector<8x128xf32>
    %5 = arith.addf %2, %4 : vector<8x128xf32>
    %cst_5 = arith.constant 0.000000e+00 : f32
    %6 = vector.broadcast %cst_5 : f32 to vector<8x128xf32>
    %7 = arith.maximumf %5, %6 : vector<8x128xf32>
    %c0_6 = arith.constant 0 : index
    %c0_7 = arith.constant 0 : index
    %8 = vector.load %arg7[%c0_6, %c0_7] : memref<8x128xf32, #tpu.memory_space<vmem>>, vector<8x128xf32>
    tpu.vector_store %arg7[%c0_6, %c0_7], %7 {strides = array<i32>} : memref<8x128xf32, #tpu.memory_space<vmem>>, vector<8x128xf32>,
    %c0_8 = arith.constant 0 : index
    %c0_9 = arith.constant 0 : index
    %9 = vector.load %arg7[%c0_8, %c0_9] : memref<8x128xf32, #tpu.memory_space<vmem>>, vector<8x128xf32>
    %c0_10 = arith.constant 0 : index
    %c0_11 = arith.constant 0 : index
    %10 = vector.load %arg3[%c0_10, %c0_11] : memref<128x128xf32, #tpu.memory_space<vmem>>, vector<128x128xf32>
    %cst_12 = arith.constant dense<0.000000e+00> : vector<8x128xf32>
    %11 = tpu.matmul %9, %10, %cst_12 {dimension_numbers = #tpu.dot_dimension_numbers<[1], [0], [0], [1], [0, 0, 1, 1], [], []>} : vector<8x128xf32>, vector<128x128xf32>, vector<8x128xf32> -> vector<8x128xf32>
    %c0_13 = arith.constant 0 : index
    %c0_14 = arith.constant 0 : index
    %12 = vector.load %arg5[%c0_13, %c0_14] : memref<1x128xf32, #tpu.memory_space<vmem>>, vector<1x128xf32>
    %13 = vector.broadcast %12 : vector<1x128xf32> to vector<8x128xf32>
    %14 = arith.addf %11, %13 : vector<8x128xf32>
    %cst_15 = arith.constant 0.000000e+00 : f32
    %15 = vector.broadcast %cst_15 : f32 to vector<8x128xf32>
    %16 = arith.maximumf %14, %15 : vector<8x128xf32>
    %c0_16 = arith.constant 0 : index
    %c0_17 = arith.constant 0 : index
    %17 = vector.load %arg6[%c0_16, %c0_17] : memref<8x128xf32, #tpu.memory_space<vmem>>, vector<8x128xf32>
    tpu.vector_store %arg6[%c0_16, %c0_17], %16 {strides = array<i32>} : memref<8x128xf32, #tpu.memory_space<vmem>>, vector<8x128xf32>,
    return
  }
  func.func @transform_0(%arg0: i32) -> (i32, i32) {
    %c0_i32 = arith.constant 0 : i32
    %c0_i32_0 = arith.constant 0 : i32
    return %arg0, %c0_i32 : i32, i32
  }
  func.func @transform_1(%arg0: i32) -> (i32, i32) {
    %c0_i32 = arith.constant 0 : i32
    %c0_i32_0 = arith.constant 0 : i32
    %c0_i32_1 = arith.constant 0 : i32
    return %c0_i32, %c0_i32_0 : i32, i32
  }
  func.func @transform_2(%arg0: i32) -> (i32, i32) {
    %c0_i32 = arith.constant 0 : i32
    %c0_i32_0 = arith.constant 0 : i32
    %c0_i32_1 = arith.constant 0 : i32
    return %c0_i32, %c0_i32_0 : i32, i32
  }
  func.func @transform_3(%arg0: i32) -> (i32, i32) {
    %c0_i32 = arith.constant 0 : i32
    %c0_i32_0 = arith.constant 0 : i32
    %c0_i32_1 = arith.constant 0 : i32
    return %c0_i32, %c0_i32_0 : i32, i32
  }
  func.func @transform_4(%arg0: i32) -> (i32, i32) {
    %c0_i32 = arith.constant 0 : i32
    %c0_i32_0 = arith.constant 0 : i32
    %c0_i32_1 = arith.constant 0 : i32
    return %c0_i32, %c0_i32_0 : i32, i32
  }
  func.func @transform_5(%arg0: i32) -> (i32, i32) {
    %c0_i32 = arith.constant 0 : i32
    %c0_i32_0 = arith.constant 0 : i32
    return %arg0, %c0_i32 : i32, i32
  }
}

module attributes {stable_mosaic.version = 11 : i64} {
  func.func @kernel(%arg0: i32, %arg1: memref<8x128xf32, #tpu.memory_space<vmem>>, %arg2: memref<128x128xf32, #tpu.memory_space<vmem>>, %arg3: memref<128x128xf32, #tpu.memory_space<vmem>>, %arg4: memref<1x128xf32, #tpu.memory_space<vmem>>, %arg5: memref<1x128xf32, #tpu.memory_space<vmem>>, %arg6: memref<8x128xf32, #tpu.memory_space<vmem>>, %arg7: memref<8x128xf32, #tpu.memory_space<vmem>>) attributes {dimension_semantics = [#tpu.dimension_semantics<parallel>], iteration_bounds = array<i64: 1>, scalar_prefetch = 0 : i64, scratch_operands = 1 : i64, tpu.core_type = #tpu.core_type<tc>, window_params = [{transform_indices = @transform_0, window_bounds = array<i64: 8, 128>}, {pipeline_mode = #tpu.pipeline_mode<synchronous>, transform_indices = @transform_1, window_bounds = array<i64: 128, 128>}, {pipeline_mode = #tpu.pipeline_mode<synchronous>, transform_indices = @transform_2, window_bounds = array<i64: 128, 128>}, {pipeline_mode = #tpu.pipeline_mode<synchronous>, transform_indices = @transform_3, window_bounds = array<i64: 1, 128>}, {pipeline_mode = #tpu.pipeline_mode<synchronous>, transform_indices = @transform_4, window_bounds = array<i64: 1, 128>}, {transform_indices = @transform_5, window_bounds = array<i64: 8, 128>}]} {
    %c0 = arith.constant 0 : index
    %c0_0 = arith.constant 0 : index
    %0 = vector.load %arg1[%c0, %c0_0] : memref<8x128xf32, #tpu.memory_space<vmem>>, vector<8x128xf32>
    %c0_1 = arith.constant 0 : index
    %c0_2 = arith.constant 0 : index
    %1 = vector.load %arg2[%c0_1, %c0_2] : memref<128x128xf32, #tpu.memory_space<vmem>>, vector<128x128xf32>
    %cst = arith.constant dense<0.000000e+00> : vector<8x128xf32>
    %2 = tpu.matmul %0, %1, %cst {dimension_numbers = #tpu.dot_dimension_numbers<[1], [0], [0], [1], [0, 0, 1, 1], [], []>} : vector<8x128xf32>, vector<128x128xf32>, vector<8x128xf32> -> vector<8x128xf32>
    %c0_3 = arith.constant 0 : index
    %c0_4 = arith.constant 0 : index
    %3 = vector.load %arg4[%c0_3, %c0_4] : memref<1x128xf32, #tpu.memory_space<vmem>>, vector<1x128xf32>
    %4 = vector.broadcast %3 : vector<1x128xf32> to vector<8x128xf32>
    %5 = arith.addf %2, %4 : vector<8x128xf32>
    %cst_5 = arith.constant 0.000000e+00 : f32
    %6 = vector.broadcast %cst_5 : f32 to vector<8x128xf32>
    %7 = arith.maximumf %5, %6 : vector<8x128xf32>
    %c0_6 = arith.constant 0 : index
    %c0_7 = arith.constant 0 : index
    %8 = vector.load %arg7[%c0_6, %c0_7] : memref<8x128xf32, #tpu.memory_space<vmem>>, vector<8x128xf32>
    tpu.vector_store %arg7[%c0_6, %c0_7], %7 {strides = array<i32>} : memref<8x128xf32, #tpu.memory_space<vmem>>, vector<8x128xf32>,
    %c0_8 = arith.constant 0 : index
    %c0_9 = arith.constant 0 : index
    %9 = vector.load %arg7[%c0_8, %c0_9] : memref<8x128xf32, #tpu.memory_space<vmem>>, vector<8x128xf32>
    %c0_10 = arith.constant 0 : index
    %c0_11 = arith.constant 0 : index
    %10 = vector.load %arg3[%c0_10, %c0_11] : memref<128x128xf32, #tpu.memory_space<vmem>>, vector<128x128xf32>
    %cst_12 = arith.constant dense<0.000000e+00> : vector<8x128xf32>
    %11 = tpu.matmul %9, %10, %cst_12 {dimension_numbers = #tpu.dot_dimension_numbers<[1], [0], [0], [1], [0, 0, 1, 1], [], []>} : vector<8x128xf32>, vector<128x128xf32>, vector<8x128xf32> -> vector<8x128xf32>
    %c0_13 = arith.constant 0 : index
    %c0_14 = arith.constant 0 : index
    %12 = vector.load %arg5[%c0_13, %c0_14] : memref<1x128xf32, #tpu.memory_space<vmem>>, vector<1x128xf32>
    %13 = vector.broadcast %12 : vector<1x128xf32> to vector<8x128xf32>
    %14 = arith.addf %11, %13 : vector<8x128xf32>
    %cst_15 = arith.constant 0.000000e+00 : f32
    %15 = vector.broadcast %cst_15 : f32 to vector<8x128xf32>
    %16 = arith.maximumf %14, %15 : vector<8x128xf32>
    %c0_16 = arith.constant 0 : index
    %c0_17 = arith.constant 0 : index
    %17 = vector.load %arg6[%c0_16, %c0_17] : memref<8x128xf32, #tpu.memory_space<vmem>>, vector<8x128xf32>
    tpu.vector_store %arg6[%c0_16, %c0_17], %16 {strides = array<i32>} : memref<8x128xf32, #tpu.memory_space<vmem>>, vector<8x128xf32>,
    return
  }
  func.func @transform_0(%arg0: i32) -> (i32, i32) {
    %c0_i32 = arith.constant 0 : i32
    %c0_i32_0 = arith.constant 0 : i32
    return %arg0, %c0_i32 : i32, i32
  }
  func.func @transform_1(%arg0: i32) -> (i32, i32) {
    %c0_i32 = arith.constant 0 : i32
    %c0_i32_0 = arith.constant 0 : i32
    %c0_i32_1 = arith.constant 0 : i32
    return %c0_i32, %c0_i32_0 : i32, i32
  }
  func.func @transform_2(%arg0: i32) -> (i32, i32) {
    %c0_i32 = arith.constant 0 : i32
    %c0_i32_0 = arith.constant 0 : i32
    %c0_i32_1 = arith.constant 0 : i32
    return %c0_i32, %c0_i32_0 : i32, i32
  }
  func.func @transform_3(%arg0: i32) -> (i32, i32) {
    %c0_i32 = arith.constant 0 : i32
    %c0_i32_0 = arith.constant 0 : i32
    %c0_i32_1 = arith.constant 0 : i32
    return %c0_i32, %c0_i32_0 : i32, i32
  }
  func.func @transform_4(%arg0: i32) -> (i32, i32) {
    %c0_i32 = arith.constant 0 : i32
    %c0_i32_0 = arith.constant 0 : i32
    %c0_i32_1 = arith.constant 0 : i32
    return %c0_i32, %c0_i32_0 : i32, i32
  }
  func.func @transform_5(%arg0: i32) -> (i32, i32) {
    %c0_i32 = arith.constant 0 : i32
    %c0_i32_0 = arith.constant 0 : i32
    return %arg0, %c0_i32 : i32, i32
  }
}

</mosaic_0001>

<bundles_post_ra>
// kernel: tpu_custom_call.1
= control target key start
LH: loop header
LB: loop body
LE: loop exit
PB: predicated region body
PF: predicated region fallthrough
CT: control target
= control target key end

     0   :  { %10 = vsyncpa [#allocation4], 0  ;;  %s640_s0 = inlined_call_operand.hbm [shape: f32[8,128], index: 0, kind: input, shape index: {}]   ;;  %s641_s1 = inlined_call_operand.hbm [shape: f32[128,128], index: 1, kind: input, shape index: {}]   ;;  %s642_s2 = inlined_call_operand.hbm [shape: f32[128,128], index: 2, kind: input, shape index: {}]   ;;  %s643_s3 = inlined_call_operand.vmem [shape: f32[1,128], index: 3, kind: input, shape index: {}]   ;;  %s644_s4 = inlined_call_operand.vmem [shape: f32[1,128], index: 4, kind: input, shape index: {}]   ;;  %s645_s5 = inlined_call_operand.hbm [shape: f32[8,128], index: 5, kind: output, shape index: {}]  }
   0x1   :  { %11 = vsyncpa [#allocation7], 0 }
   0x2   :  { %12 = vsyncpa [#allocation5], 0  ;;  %s525_s18 = smov [#allocation6]   ;;  %s431_s22 = scalar_lea.hbm %s641_s1, 2048 }
   0x3   :  { %s28_s19 = sshll.u32 %s525_s18, 4  ;;  %p432_p0 = scmp.ne.s32.totalorder %s641_s1, %s431_s22  ;;  %s29_s19 = int_to_ptr.vmem [resolvable:$true] %s28_s19 }
   0x4   :  { %p435_p1 = scmp.lt.u32.totalorder %s431_s22, %s641_s1 }
   0x6   :  { %p437_p2 = pnand %p435_p1, %p432_p0 }
   0x8   :  { %440 = shalt.err (!%p437_p2)
}
   0x9   :  { %s441_s27 = scalar_lea.vmem %s29_s19, 2048  ;;  %p446_p4 = scmp.lt.s32.totalorder %s29_s19, %s29_s19 }
   0xa   :  { %p442_p3 = scmp.ne.s32.totalorder %s29_s19, %s441_s27  ;;  %p447_p5 = scmp.lt.s32.totalorder %s441_s27, %s441_s27 }
   0xc   :  { %p448_p6 = por %p447_p5, %p446_p4 }
   0xe   :  { %p449_p7 = pnand %p448_p6, %p442_p3 }
  0x10   :  { %452 = shalt.err (!%p449_p7)
}
  0x11   :  { %s526_s28 = smov 128   ;;  %s527_s29 = smov 8  }
  0x12   :  { %34 = dma.hbm_to_vmem [thread:$0]  %s641_s1, 2048, %s29_s19, [#allocation7], %s526_s28, %s526_s28, %s527_s29  }
  0x13   :  { %s528_s7 = smov [#allocation3]   ;;  %s529_s9 = smov [#allocation8]  }
  0x14   :  { %s19_s8 = sshll.u32 %s528_s7, 4  ;;  %s40_s10 = sshll.u32 %s529_s9, 4  ;;  %s20_s8 = int_to_ptr.vmem [resolvable:$true] %s19_s8  ;;  %s41_s10 = int_to_ptr.vmem [resolvable:$true] %s40_s10 }
  0x15   :  { %s453_s13 = scalar_lea.hbm %s640_s0, 128 }
  0x16   :  { %p454_p8 = scmp.ne.s32.totalorder %s640_s0, %s453_s13  ;;  %p457_p9 = scmp.lt.u32.totalorder %s453_s13, %s640_s0 }
  0x18   :  { %p459_p10 = pnand %p457_p9, %p454_p8 }
  0x1a   :  { %462 = shalt.err (!%p459_p10)
}
  0x1b   :  { %s463_s1 = scalar_lea.vmem %s20_s8, 128  ;;  %p468_p12 = scmp.lt.s32.totalorder %s20_s8, %s20_s8 }
  0x1c   :  { %p464_p11 = scmp.ne.s32.totalorder %s20_s8, %s463_s1  ;;  %p469_p13 = scmp.lt.s32.totalorder %s463_s1, %s463_s1 }
  0x1e   :  { %p470_p0 = por %p469_p13, %p468_p12 }
  0x20   :  { %p471_p1 = pnand %p470_p0, %p464_p11 }
  0x22   :  { %474 = shalt.err (!%p471_p1)
}
  0x23   :  { %22 = dma.hbm_to_vmem [thread:$0]  %s640_s0, 128, %s20_s8, [#allocation4]  }
  0x24   :  { %s475_s22 = scalar_lea.hbm %s642_s2, 2048 }
  0x25   :  { %p476_p2 = scmp.ne.s32.totalorder %s642_s2, %s475_s22  ;;  %p479_p3 = scmp.lt.u32.totalorder %s475_s22, %s642_s2 }
  0x27   :  { %p481_p4 = pnand %p479_p3, %p476_p2 }
  0x29   :  { %484 = shalt.err (!%p481_p4)
}
  0x2a   :  { %s485_s27 = scalar_lea.vmem %s41_s10, 2048  ;;  %p490_p6 = scmp.lt.s32.totalorder %s41_s10, %s41_s10 }
  0x2b   :  { %p486_p5 = scmp.ne.s32.totalorder %s41_s10, %s485_s27  ;;  %p491_p7 = scmp.lt.s32.totalorder %s485_s27, %s485_s27 }
  0x2d   :  { %p492_p8 = por %p491_p7, %p490_p6 }
  0x2f   :  { %p493_p9 = pnand %p492_p8, %p486_p5 }
  0x31   :  { %496 = shalt.err (!%p493_p9)
}
  0x32   :  { %46 = dma.hbm_to_vmem [thread:$0]  %s642_s2, 2048, %s41_s10, [#allocation7], %s526_s28, %s526_s28, %s527_s29  }
  0x33   :  { %519 = dma.done.wait [#allocation4], 128  }
  0x34   :  { %520 = vsyncadd [#allocation4], 4294967168 }
  0x35   :  { %521 = dma.done.wait [#allocation7], 4096  }
  0x36   :  { %522 = vsyncadd [#allocation7], 4294963200  ;;  %v530_v0 = vmov 0.0|0.0   ;;  %vm531_vm0 = vmmov 0   ;;  %v532_v1 = vmov 0.0   ;;  %v61_v2 = vld [vmem:[#allocation6] sm:$0xff] }
  0x37   :  { %374 = vmatprep.subr.bf16.mxu0 %v530_v0  ;;  %336 = vmatprep.mubr.msk.f32.mxu0 %vm531_vm0, %v532_v1  ;;  %v62_v3 = vld [vmem:[#allocation6 + $0x8] sm:$0xff]  ;;  %v63_v4 = vld [vmem:[#allocation6 + $0x10] sm:$0xff]  ;;  %v64_v6 = vld [vmem:[#allocation6 + $0x18] sm:$0xff]  ;;  %s533_s7 = smov [#allocation9]  }
  0x38   :  { %398 = vmatprep.subr.bf16.mxu1 %v530_v0  ;;  %371 = vmatprep.mubr.msk.f32.mxu1 %vm531_vm0, %v532_v1  ;;  %v375_v5 = vpack.c.bf16 %v62_v3, %v61_v2  ;;  %v378_v7 = vpack.c.bf16 %v64_v6, %v63_v4  ;;  %v65_v8 = vld [vmem:[#allocation6 + $0x20] sm:$0xff]  ;;  %v66_v9 = vld [vmem:[#allocation6 + $0x28] sm:$0xff]  ;;  %v159_v12 = vld [vmem:[#allocation8 + $0x10] sm:$0xff]  ;;  %s258_s8 = sshll.u32 %s533_s7, 4  ;;  %s259_s8 = int_to_ptr.vmem [resolvable:$true] %s258_s8 }
  0x39   :  { %v157_v10 = vld [vmem:[#allocation8] sm:$0xff]  ;;  %v158_v11 = vld [vmem:[#allocation8 + $0x8] sm:$0xff]  ;;  %v160_v13 = vld [vmem:[#allocation8 + $0x18] sm:$0xff]  ;;  %v381_v14 = vpack.c.bf16 %v66_v9, %v65_v8  ;;  %s497_s9 = scalar_lea.vmem %s259_s8, 128  ;;  %p502_p11 = scmp.lt.s32.totalorder %s259_s8, %s259_s8 }
  0x3a   :  { %376 = vmatpush3.bf16.msra.mxu0 %v375_v5  ;;  %v399_v15 = vpack.c.bf16 %v158_v11, %v157_v10  ;;  %v67_v16 = vld [vmem:[#allocation6 + $0x30] sm:$0xff]  ;;  %v68_v17 = vld [vmem:[#allocation6 + $0x38] sm:$0xff]  ;;  %v402_v18 = vpack.c.bf16 %v160_v13, %v159_v12  ;;  %v161_v19 = vld [vmem:[#allocation8 + $0x20] sm:$0xff]  ;;  %p498_p10 = scmp.ne.s32.totalorder %s259_s8, %s497_s9  ;;  %p503_p12 = scmp.lt.s32.totalorder %s497_s9, %s497_s9 }
  0x3b   :  { %377 = vmatprep.subr.bf16.mxu0 %v530_v0  ;;  %v162_v20 = vld [vmem:[#allocation8 + $0x28] sm:$0xff]  ;;  %v384_v21 = vpack.c.bf16 %v68_v17, %v67_v16  ;;  %v69_v22 = vld [vmem:[#allocation6 + $0x40] sm:$0xff]  ;;  %v163_v25 = vld [vmem:[#allocation8 + $0x30] sm:$0xff] }
  0x3c   :  { %400 = vmatpush3.bf16.msra.mxu1 %v399_v15  ;;  %v70_v23 = vld [vmem:[#allocation6 + $0x48] sm:$0xff]  ;;  %v405_v24 = vpack.c.bf16 %v162_v20, %v161_v19  ;;  %v164_v26 = vld [vmem:[#allocation8 + $0x38] sm:$0xff]  ;;  %v71_v28 = vld [vmem:[#allocation6 + $0x50] sm:$0xff]  ;;  %p504_p13 = por %p503_p12, %p502_p11 }
  0x3d   :  { %401 = vmatprep.subr.bf16.mxu1 %v530_v0  ;;  %v387_v27 = vpack.c.bf16 %v70_v23, %v69_v22  ;;  %v72_v29 = vld [vmem:[#allocation6 + $0x58] sm:$0xff]  ;;  %v408_v30 = vpack.c.bf16 %v164_v26, %v163_v25  ;;  %v165_v31 = vld [vmem:[#allocation8 + $0x40] sm:$0xff]  ;;  %v166_v32 = vld [vmem:[#allocation8 + $0x48] sm:$0xff] }
  0x3e   :  { %379 = vmatpush3.bf16.msra.mxu0 %v378_v7  ;;  %v390_v33 = vpack.c.bf16 %v72_v29, %v71_v28  ;;  %v73_v34 = vld [vmem:[#allocation6 + $0x60] sm:$0xff]  ;;  %v74_v35 = vld [vmem:[#allocation6 + $0x68] sm:$0xff]  ;;  %v411_v36 = vpack.c.bf16 %v166_v32, %v165_v31  ;;  %v167_v37 = vld [vmem:[#allocation8 + $0x50] sm:$0xff]  ;;  %p505_p0 = pnand %p504_p13, %p498_p10 }
  0x3f   :  { %380 = vmatprep.subr.bf16.mxu0 %v530_v0  ;;  %v168_v38 = vld [vmem:[#allocation8 + $0x58] sm:$0xff]  ;;  %v393_v39 = vpack.c.bf16 %v74_v35, %v73_v34  ;;  %v75_v40 = vld [vmem:[#allocation6 + $0x70] sm:$0xff]  ;;  %v169_v43 = vld [vmem:[#allocation8 + $0x60] sm:$0xff] }
  0x40   :  { %403 = vmatpush3.bf16.msra.mxu1 %v402_v18  ;;  %v76_v41 = vld [vmem:[#allocation6 + $0x78] sm:$0xff]  ;;  %v414_v42 = vpack.c.bf16 %v168_v38, %v167_v37  ;;  %v170_v44 = vld [vmem:[#allocation8 + $0x68] sm:$0xff]  ;;  %v171_v48 = vld [vmem:[#allocation8 + $0x70] sm:$0xff] }
  0x41   :  { %404 = vmatprep.subr.bf16.mxu1 %v530_v0  ;;  %v396_v45 = vpack.c.bf16 %v76_v41, %v75_v40  ;;  %v417_v46 = vpack.c.bf16 %v170_v44, %v169_v43  ;;  %v60_v47 = vld [vmem:[#allocation3] sm:$0xff] }
  0x42   :  { %382 = vmatpush3.bf16.msra.mxu0 %v381_v14  ;;  %v172_v49 = vld [vmem:[#allocation8 + $0x78] sm:$0xff] }
  0x43   :  { %383 = vmatprep.subr.bf16.mxu0 %v530_v0  ;;  %v420_v50 = vpack.c.bf16 %v172_v49, %v171_v48  ;;  %v268_v51 = vld [vmem:[%s643_s3] ss:$0 sm:$0xff] }
  0x44   :  { %406 = vmatpush3.bf16.msra.mxu1 %v405_v24  ;;  %v269_v56 = vld [vmem:[%s644_s4] ss:$0 sm:$0xff] }
  0x45   :  { %407 = vmatprep.subr.bf16.mxu1 %v530_v0 }
  0x46   :  { %385 = vmatpush3.bf16.msra.mxu0 %v384_v21 }
  0x47   :  { %386 = vmatprep.subr.bf16.mxu0 %v530_v0 }
  0x48   :  { %409 = vmatpush3.bf16.msra.mxu1 %v408_v30 }
  0x49   :  { %410 = vmatprep.subr.bf16.mxu1 %v530_v0 }
  0x4a   :  { %388 = vmatpush3.bf16.msra.mxu0 %v387_v27 }
  0x4b   :  { %389 = vmatprep.subr.bf16.mxu0 %v530_v0 }
  0x4c   :  { %412 = vmatpush3.bf16.msra.mxu1 %v411_v36 }
  0x4d   :  { %413 = vmatprep.subr.bf16.mxu1 %v530_v0 }
  0x4e   :  { %391 = vmatpush3.bf16.msra.mxu0 %v390_v33 }
  0x4f   :  { %392 = vmatprep.subr.bf16.mxu0 %v530_v0 }
  0x50   :  { %415 = vmatpush3.bf16.msra.mxu1 %v414_v42 }
  0x51   :  { %416 = vmatprep.subr.bf16.mxu1 %v530_v0 }
  0x52   :  { %394 = vmatpush3.bf16.msra.mxu0 %v393_v39 }
  0x53   :  { %395 = vmatprep.subr.bf16.mxu0 %v530_v0 }
  0x54   :  { %418 = vmatpush3.bf16.msra.mxu1 %v417_v46 }
  0x55   :  { %419 = vmatprep.subr.bf16.mxu1 %v530_v0 }
  0x56   :  { %397 = vmatpush3.bf16.msra.mxu0 %v396_v45 }
  0x58   :  { %421 = vmatpush3.bf16.msra.mxu1 %v420_v50 }
  0x59   :  { %337 = vmatmul.mubr.f32.vlgmr.msra.gmra.mrb[0].mxu0 %v60_v47 }
 0x12c   :  { %v150_v52 = vpop.f32.mrb[0].mxu0 }
 0x12d   :  { %v151_v53 = vadd.f32 %v268_v51, %v150_v52  ;;  %v338_v54 = vpop.f32.mrb[1].mxu0 }
 0x12f   :  { %v154_v55 = vmax.f32 %v151_v53, 0.0 }
 0x131   :  { %372 = vmatmul.mubr.f32.vlgmr.msra.gmra.mrb[0].mxu1 %v154_v55 }
 0x204   :  { %v246_v57 = vpop.f32.mrb[0].mxu1 }
 0x205   :  { %v247_v58 = vadd.f32 %v269_v56, %v246_v57  ;;  %v373_v59 = vpop.f32.mrb[1].mxu1 }
 0x207   :  { %v250_v60 = vmax.f32 %v247_v58, 0.0 }
 0x209   :  { %251 = vst [vmem:[#allocation9] sm:$0xff] %v250_v60 }
 0x20a   :  { %508 = shalt.err (!%p505_p0)
}
 0x20b   :  { %s509_s11 = scalar_lea.hbm %s645_s5, 128 }
 0x20c   :  { %p510_p1 = scmp.ne.s32.totalorder %s645_s5, %s509_s11  ;;  %p513_p2 = scmp.lt.u32.totalorder %s509_s11, %s645_s5 }
 0x20e   :  { %p515_p3 = pnand %p513_p2, %p510_p1 }
 0x210   :  { %518 = shalt.err (!%p515_p3)
}
 0x211   :  { %261 = dma.vmem_to_hbm [thread:$0]  %s259_s8, 128, %s645_s5, [#allocation5]  }
 0x212   :  { %523 = dma.done.wait [#allocation5], 128  }
 0x213   :  { %524 = vsyncadd [#allocation5], 4294967168 }
 0x214   :  { %265 = vsyncpa [#allocation4], 1 }
 0x215   :  { %266 = vsyncpa [#allocation7], 1 }
 0x216   :  { %267 = vsyncpa [#allocation5], 1 }

// kernel: tpu_custom_call.1
= control target key start
LH: loop header
LB: loop body
LE: loop exit
PB: predicated region body
PF: predicated region fallthrough
CT: control target
= control target key end

     0   :  { %10 = vsyncpa [#allocation4], 0  ;;  %s640_s0 = inlined_call_operand.hbm [shape: f32[8,128], index: 0, kind: input, shape index: {}]   ;;  %s641_s1 = inlined_call_operand.hbm [shape: f32[128,128], index: 1, kind: input, shape index: {}]   ;;  %s642_s2 = inlined_call_operand.hbm [shape: f32[128,128], index: 2, kind: input, shape index: {}]   ;;  %s643_s3 = inlined_call_operand.vmem [shape: f32[1,128], index: 3, kind: input, shape index: {}]   ;;  %s644_s4 = inlined_call_operand.vmem [shape: f32[1,128], index: 4, kind: input, shape index: {}]   ;;  %s645_s5 = inlined_call_operand.hbm [shape: f32[8,128], index: 5, kind: output, shape index: {}]  }
   0x1   :  { %11 = vsyncpa [#allocation7], 0 }
   0x2   :  { %12 = vsyncpa [#allocation5], 0  ;;  %s525_s18 = smov [#allocation6]   ;;  %s431_s22 = scalar_lea.hbm %s641_s1, 2048 }
   0x3   :  { %s28_s19 = sshll.u32 %s525_s18, 4  ;;  %p432_p0 = scmp.ne.s32.totalorder %s641_s1, %s431_s22  ;;  %s29_s19 = int_to_ptr.vmem [resolvable:$true] %s28_s19 }
   0x4   :  { %p435_p1 = scmp.lt.u32.totalorder %s431_s22, %s641_s1 }
   0x6   :  { %p437_p2 = pnand %p435_p1, %p432_p0 }
   0x8   :  { %440 = shalt.err (!%p437_p2)
}
   0x9   :  { %s441_s27 = scalar_lea.vmem %s29_s19, 2048  ;;  %p446_p4 = scmp.lt.s32.totalorder %s29_s19, %s29_s19 }
   0xa   :  { %p442_p3 = scmp.ne.s32.totalorder %s29_s19, %s441_s27  ;;  %p447_p5 = scmp.lt.s32.totalorder %s441_s27, %s441_s27 }
   0xc   :  { %p448_p6 = por %p447_p5, %p446_p4 }
   0xe   :  { %p449_p7 = pnand %p448_p6, %p442_p3 }
  0x10   :  { %452 = shalt.err (!%p449_p7)
}
  0x11   :  { %s526_s28 = smov 128   ;;  %s527_s29 = smov 8  }
  0x12   :  { %34 = dma.hbm_to_vmem [thread:$0]  %s641_s1, 2048, %s29_s19, [#allocation7], %s526_s28, %s526_s28, %s527_s29  }
  0x13   :  { %s528_s7 = smov [#allocation3]   ;;  %s529_s9 = smov [#allocation8]  }
  0x14   :  { %s19_s8 = sshll.u32 %s528_s7, 4  ;;  %s40_s10 = sshll.u32 %s529_s9, 4  ;;  %s20_s8 = int_to_ptr.vmem [resolvable:$true] %s19_s8  ;;  %s41_s10 = int_to_ptr.vmem [resolvable:$true] %s40_s10 }
  0x15   :  { %s453_s13 = scalar_lea.hbm %s640_s0, 128 }
  0x16   :  { %p454_p8 = scmp.ne.s32.totalorder %s640_s0, %s453_s13  ;;  %p457_p9 = scmp.lt.u32.totalorder %s453_s13, %s640_s0 }
  0x18   :  { %p459_p10 = pnand %p457_p9, %p454_p8 }
  0x1a   :  { %462 = shalt.err (!%p459_p10)
}
  0x1b   :  { %s463_s1 = scalar_lea.vmem %s20_s8, 128  ;;  %p468_p12 = scmp.lt.s32.totalorder %s20_s8, %s20_s8 }
  0x1c   :  { %p464_p11 = scmp.ne.s32.totalorder %s20_s8, %s463_s1  ;;  %p469_p13 = scmp.lt.s32.totalorder %s463_s1, %s463_s1 }
  0x1e   :  { %p470_p0 = por %p469_p13, %p468_p12 }
  0x20   :  { %p471_p1 = pnand %p470_p0, %p464_p11 }
  0x22   :  { %474 = shalt.err (!%p471_p1)
}
  0x23   :  { %22 = dma.hbm_to_vmem [thread:$0]  %s640_s0, 128, %s20_s8, [#allocation4]  }
  0x24   :  { %s475_s22 = scalar_lea.hbm %s642_s2, 2048 }
  0x25   :  { %p476_p2 = scmp.ne.s32.totalorder %s642_s2, %s475_s22  ;;  %p479_p3 = scmp.lt.u32.totalorder %s475_s22, %s642_s2 }
  0x27   :  { %p481_p4 = pnand %p479_p3, %p476_p2 }
  0x29   :  { %484 = shalt.err (!%p481_p4)
}
  0x2a   :  { %s485_s27 = scalar_lea.vmem %s41_s10, 2048  ;;  %p490_p6 = scmp.lt.s32.totalorder %s41_s10, %s41_s10 }
  0x2b   :  { %p486_p5 = scmp.ne.s32.totalorder %s41_s10, %s485_s27  ;;  %p491_p7 = scmp.lt.s32.totalorder %s485_s27, %s485_s27 }
  0x2d   :  { %p492_p8 = por %p491_p7, %p490_p6 }
  0x2f   :  { %p493_p9 = pnand %p492_p8, %p486_p5 }
  0x31   :  { %496 = shalt.err (!%p493_p9)
}
  0x32   :  { %46 = dma.hbm_to_vmem [thread:$0]  %s642_s2, 2048, %s41_s10, [#allocation7], %s526_s28, %s526_s28, %s527_s29  }
  0x33   :  { %519 = dma.done.wait [#allocation4], 128  }
  0x34   :  { %520 = vsyncadd [#allocation4], 4294967168 }
  0x35   :  { %521 = dma.done.wait [#allocation7], 4096  }
  0x36   :  { %522 = vsyncadd [#allocation7], 4294963200  ;;  %v530_v0 = vmov 0.0|0.0   ;;  %vm531_vm0 = vmmov 0   ;;  %v532_v1 = vmov 0.0   ;;  %v61_v2 = vld [vmem:[#allocation6] sm:$0xff] }
  0x37   :  { %374 = vmatprep.subr.bf16.mxu0 %v530_v0  ;;  %336 = vmatprep.mubr.msk.f32.mxu0 %vm531_vm0, %v532_v1  ;;  %v62_v3 = vld [vmem:[#allocation6 + $0x8] sm:$0xff]  ;;  %v63_v4 = vld [vmem:[#allocation6 + $0x10] sm:$0xff]  ;;  %v64_v6 = vld [vmem:[#allocation6 + $0x18] sm:$0xff]  ;;  %s533_s7 = smov [#allocation9]  }
  0x38   :  { %398 = vmatprep.subr.bf16.mxu1 %v530_v0  ;;  %371 = vmatprep.mubr.msk.f32.mxu1 %vm531_vm0, %v532_v1  ;;  %v375_v5 = vpack.c.bf16 %v62_v3, %v61_v2  ;;  %v378_v7 = vpack.c.bf16 %v64_v6, %v63_v4  ;;  %v65_v8 = vld [vmem:[#allocation6 + $0x20] sm:$0xff]  ;;  %v66_v9 = vld [vmem:[#allocation6 + $0x28] sm:$0xff]  ;;  %v159_v12 = vld [vmem:[#allocation8 + $0x10] sm:$0xff]  ;;  %s258_s8 = sshll.u32 %s533_s7, 4  ;;  %s259_s8 = int_to_ptr.vmem [resolvable:$true] %s258_s8 }
  0x39   :  { %v157_v10 = vld [vmem:[#allocation8] sm:$0xff]  ;;  %v158_v11 = vld [vmem:[#allocation8 + $0x8] sm:$0xff]  ;;  %v160_v13 = vld [vmem:[#allocation8 + $0x18] sm:$0xff]  ;;  %v381_v14 = vpack.c.bf16 %v66_v9, %v65_v8  ;;  %s497_s9 = scalar_lea.vmem %s259_s8, 128  ;;  %p502_p11 = scmp.lt.s32.totalorder %s259_s8, %s259_s8 }
  0x3a   :  { %376 = vmatpush3.bf16.msra.mxu0 %v375_v5  ;;  %v399_v15 = vpack.c.bf16 %v158_v11, %v157_v10  ;;  %v67_v16 = vld [vmem:[#allocation6 + $0x30] sm:$0xff]  ;;  %v68_v17 = vld [vmem:[#allocation6 + $0x38] sm:$0xff]  ;;  %v402_v18 = vpack.c.bf16 %v160_v13, %v159_v12  ;;  %v161_v19 = vld [vmem:[#allocation8 + $0x20] sm:$0xff]  ;;  %p498_p10 = scmp.ne.s32.totalorder %s259_s8, %s497_s9  ;;  %p503_p12 = scmp.lt.s32.totalorder %s497_s9, %s497_s9 }
  0x3b   :  { %377 = vmatprep.subr.bf16.mxu0 %v530_v0  ;;  %v162_v20 = vld [vmem:[#allocation8 + $0x28] sm:$0xff]  ;;  %v384_v21 = vpack.c.bf16 %v68_v17, %v67_v16  ;;  %v69_v22 = vld [vmem:[#allocation6 + $0x40] sm:$0xff]  ;;  %v163_v25 = vld [vmem:[#allocation8 + $0x30] sm:$0xff] }
  0x3c   :  { %400 = vmatpush3.bf16.msra.mxu1 %v399_v15  ;;  %v70_v23 = vld [vmem:[#allocation6 + $0x48] sm:$0xff]  ;;  %v405_v24 = vpack.c.bf16 %v162_v20, %v161_v19  ;;  %v164_v26 = vld [vmem:[#allocation8 + $0x38] sm:$0xff]  ;;  %v71_v28 = vld [vmem:[#allocation6 + $0x50] sm:$0xff]  ;;  %p504_p13 = por %p503_p12, %p502_p11 }
  0x3d   :  { %401 = vmatprep.subr.bf16.mxu1 %v530_v0  ;;  %v387_v27 = vpack.c.bf16 %v70_v23, %v69_v22  ;;  %v72_v29 = vld [vmem:[#allocation6 + $0x58] sm:$0xff]  ;;  %v408_v30 = vpack.c.bf16 %v164_v26, %v163_v25  ;;  %v165_v31 = vld [vmem:[#allocation8 + $0x40] sm:$0xff]  ;;  %v166_v32 = vld [vmem:[#allocation8 + $0x48] sm:$0xff] }
  0x3e   :  { %379 = vmatpush3.bf16.msra.mxu0 %v378_v7  ;;  %v390_v33 = vpack.c.bf16 %v72_v29, %v71_v28  ;;  %v73_v34 = vld [vmem:[#allocation6 + $0x60] sm:$0xff]  ;;  %v74_v35 = vld [vmem:[#allocation6 + $0x68] sm:$0xff]  ;;  %v411_v36 = vpack.c.bf16 %v166_v32, %v165_v31  ;;  %v167_v37 = vld [vmem:[#allocation8 + $0x50] sm:$0xff]  ;;  %p505_p0 = pnand %p504_p13, %p498_p10 }
  0x3f   :  { %380 = vmatprep.subr.bf16.mxu0 %v530_v0  ;;  %v168_v38 = vld [vmem:[#allocation8 + $0x58] sm:$0xff]  ;;  %v393_v39 = vpack.c.bf16 %v74_v35, %v73_v34  ;;  %v75_v40 = vld [vmem:[#allocation6 + $0x70] sm:$0xff]  ;;  %v169_v43 = vld [vmem:[#allocation8 + $0x60] sm:$0xff] }
  0x40   :  { %403 = vmatpush3.bf16.msra.mxu1 %v402_v18  ;;  %v76_v41 = vld [vmem:[#allocation6 + $0x78] sm:$0xff]  ;;  %v414_v42 = vpack.c.bf16 %v168_v38, %v167_v37  ;;  %v170_v44 = vld [vmem:[#allocation8 + $0x68] sm:$0xff]  ;;  %v171_v48 = vld [vmem:[#allocation8 + $0x70] sm:$0xff] }
  0x41   :  { %404 = vmatprep.subr.bf16.mxu1 %v530_v0  ;;  %v396_v45 = vpack.c.bf16 %v76_v41, %v75_v40  ;;  %v417_v46 = vpack.c.bf16 %v170_v44, %v169_v43  ;;  %v60_v47 = vld [vmem:[#allocation3] sm:$0xff] }
  0x42   :  { %382 = vmatpush3.bf16.msra.mxu0 %v381_v14  ;;  %v172_v49 = vld [vmem:[#allocation8 + $0x78] sm:$0xff] }
  0x43   :  { %383 = vmatprep.subr.bf16.mxu0 %v530_v0  ;;  %v420_v50 = vpack.c.bf16 %v172_v49, %v171_v48  ;;  %v268_v51 = vld [vmem:[%s643_s3] ss:$0 sm:$0xff] }
  0x44   :  { %406 = vmatpush3.bf16.msra.mxu1 %v405_v24  ;;  %v269_v56 = vld [vmem:[%s644_s4] ss:$0 sm:$0xff] }
  0x45   :  { %407 = vmatprep.subr.bf16.mxu1 %v530_v0 }
  0x46   :  { %385 = vmatpush3.bf16.msra.mxu0 %v384_v21 }
  0x47   :  { %386 = vmatprep.subr.bf16.mxu0 %v530_v0 }
  0x48   :  { %409 = vmatpush3.bf16.msra.mxu1 %v408_v30 }
  0x49   :  { %410 = vmatprep.subr.bf16.mxu1 %v530_v0 }
  0x4a   :  { %388 = vmatpush3.bf16.msra.mxu0 %v387_v27 }
  0x4b   :  { %389 = vmatprep.subr.bf16.mxu0 %v530_v0 }
  0x4c   :  { %412 = vmatpush3.bf16.msra.mxu1 %v411_v36 }
  0x4d   :  { %413 = vmatprep.subr.bf16.mxu1 %v530_v0 }
  0x4e   :  { %391 = vmatpush3.bf16.msra.mxu0 %v390_v33 }
  0x4f   :  { %392 = vmatprep.subr.bf16.mxu0 %v530_v0 }
  0x50   :  { %415 = vmatpush3.bf16.msra.mxu1 %v414_v42 }
  0x51   :  { %416 = vmatprep.subr.bf16.mxu1 %v530_v0 }
  0x52   :  { %394 = vmatpush3.bf16.msra.mxu0 %v393_v39 }
  0x53   :  { %395 = vmatprep.subr.bf16.mxu0 %v530_v0 }
  0x54   :  { %418 = vmatpush3.bf16.msra.mxu1 %v417_v46 }
  0x55   :  { %419 = vmatprep.subr.bf16.mxu1 %v530_v0 }
  0x56   :  { %397 = vmatpush3.bf16.msra.mxu0 %v396_v45 }
  0x58   :  { %421 = vmatpush3.bf16.msra.mxu1 %v420_v50 }
  0x59   :  { %337 = vmatmul.mubr.f32.vlgmr.msra.gmra.mrb[0].mxu0 %v60_v47 }
 0x12c   :  { %v150_v52 = vpop.f32.mrb[0].mxu0 }
 0x12d   :  { %v151_v53 = vadd.f32 %v268_v51, %v150_v52  ;;  %v338_v54 = vpop.f32.mrb[1].mxu0 }
 0x12f   :  { %v154_v55 = vmax.f32 %v151_v53, 0.0 }
 0x131   :  { %372 = vmatmul.mubr.f32.vlgmr.msra.gmra.mrb[0].mxu1 %v154_v55 }
 0x204   :  { %v246_v57 = vpop.f32.mrb[0].mxu1 }
 0x205   :  { %v247_v58 = vadd.f32 %v269_v56, %v246_v57  ;;  %v373_v59 = vpop.f32.mrb[1].mxu1 }
 0x207   :  { %v250_v60 = vmax.f32 %v247_v58, 0.0 }
 0x209   :  { %251 = vst [vmem:[#allocation9] sm:$0xff] %v250_v60 }
 0x20a   :  { %508 = shalt.err (!%p505_p0)
}
 0x20b   :  { %s509_s11 = scalar_lea.hbm %s645_s5, 128 }
 0x20c   :  { %p510_p1 = scmp.ne.s32.totalorder %s645_s5, %s509_s11  ;;  %p513_p2 = scmp.lt.u32.totalorder %s509_s11, %s645_s5 }
 0x20e   :  { %p515_p3 = pnand %p513_p2, %p510_p1 }
 0x210   :  { %518 = shalt.err (!%p515_p3)
}
 0x211   :  { %261 = dma.vmem_to_hbm [thread:$0]  %s259_s8, 128, %s645_s5, [#allocation5]  }
 0x212   :  { %523 = dma.done.wait [#allocation5], 128  }
 0x213   :  { %524 = vsyncadd [#allocation5], 4294967168 }
 0x214   :  { %265 = vsyncpa [#allocation4], 1 }
 0x215   :  { %266 = vsyncpa [#allocation7], 1 }
 0x216   :  { %267 = vsyncpa [#allocation5], 1 }

</bundles_post_ra>
